<compile_context>
chip_gen: v7x
topology: tpu7x:2x2x1
jax: 0.10.0
libtpu: 0.0.40
codegen_flags: <defaults>
</compile_context>

<pallas_src>
import jax
import jax.numpy as jnp
from jax import lax
from jax.experimental import pallas as pl
from jax.experimental.pallas import tpu as pltpu


def _cdiv(a, b):
    return -(-a // b)


def mlp_kernel(x_ref, w1_ref, b1w2_ref, b2_ref, o_ref):
    # x_ref:    [TB, D] input tile, straight from HBM (no wrapper copy)
    # w1_ref:   [H, D]  layer-1 weight in PyTorch (out, in) layout
    # b1w2_ref: [H, 2]  column 0 = b1, column 1 = w2 (layer-2 weight row)
    # b2_ref:   [1]     layer-2 bias, SMEM scalar
    # o_ref:    [1, TB] lane-dense output row
    x = x_ref[...]
    w1 = w1_ref[...]
    # Layer 1 on the MXU, contracting the D axes (transposed-RHS matmul) so
    # the batch lands on the lane axis: [H, D] x [TB, D]^T -> [H, TB].
    h = lax.dot_general(w1, x, (((1,), (1,)), ((), ())),
                        preferred_element_type=jnp.float32)
    bw = b1w2_ref[...]
    b1 = bw[:, 0:1]                      # [H, 1]
    w2 = bw[:, 1:2]                      # [H, 1]
    h = jnp.maximum(h + b1, 0.0)         # bias + ReLU on the VPU
    # Layer 2 (out_features == 1): VPU multiply + XLU sublane reduction over H
    # -> naturally lane-dense [1, TB]; no masked stores, no relayout.
    out = jnp.sum(h * w2, axis=0, keepdims=True) + b2_ref[0]
    o_ref[...] = out.astype(o_ref.dtype)


def _choose_tile(B, tb_max):
    # Small batch: one full-extent tile (this regime is launch/DMA-descriptor
    # bound; splitting only adds per-step overhead).
    if B <= min(tb_max, 1024):
        return B, 1
    # Large batch: >= 2 roughly-equal, 128-aligned tiles (v7x megacore),
    # capped at tb_max; the last tile may be ragged (no batch padding).
    n_tiles = max(2, _cdiv(B, tb_max))
    tb = _cdiv(_cdiv(B, n_tiles), 128) * 128
    n_tiles = _cdiv(B, tb)
    return tb, n_tiles


def baseline_network_forward(x, w1, b1, w2, b2, *, tb_max=16384):
    """x: [B, D] f32.  Params in PyTorch layout: w1 [H, D], b1 [H], w2 [1, H], b2 [1].

    Returns [B, 1] f32, matching BaselineNetwork.forward (self.net only).
    """
    B, D = x.shape
    H = w1.shape[0]
    tb, n_tiles = _choose_tile(B, tb_max)

    # Tiny wrapper-side prep (a few hundred bytes, not proportional to B):
    # pack b1 & w2 into one VMEM-resident operand, b2 into an SMEM scalar.
    b1w2 = jnp.concatenate(
        [b1.reshape(H, 1), w2.reshape(H, 1)], axis=1).astype(jnp.float32)
    b2s = jnp.asarray(b2, jnp.float32).reshape(1)

    flops = 2 * B * D * H + 4 * B * H              # matmul + bias/relu/mul/reduce
    bytes_accessed = 4 * (B * D + D * H + 2 * H + 1 + B)

    out_row = pl.pallas_call(
        mlp_kernel,
        out_shape=jax.ShapeDtypeStruct((1, B), jnp.float32),
        grid=(n_tiles,),
        in_specs=[
            pl.BlockSpec((tb, D), lambda i: (i, 0)),            # x tiles: double-buffered
            pl.BlockSpec((H, D), lambda i: (0, 0)),             # w1 stays VMEM-resident
            pl.BlockSpec((H, 2), lambda i: (0, 0)),             # packed [b1 | w2]
            pl.BlockSpec(memory_space=pltpu.MemorySpace.SMEM),  # b2 scalar in SMEM
        ],
        out_specs=pl.BlockSpec((1, tb), lambda i: (0, i)),      # lane-dense output row
        compiler_params=pltpu.CompilerParams(
            dimension_semantics=("parallel",)),                 # shard tiles on v7x's 2 TCs
        cost_estimate=pl.CostEstimate(
            flops=flops, transcendentals=0, bytes_accessed=bytes_accessed),
    )(x.astype(jnp.float32), w1.astype(jnp.float32), b1w2, b2s)

    # (1, B) -> (B, 1): the only wrapper op besides the tiny param packing.
    return out_row.reshape(B, 1)


def init_linear_params(key, fan_in, fan_out):
    # Mimic torch nn.Linear default init: U(-1/sqrt(fan_in), 1/sqrt(fan_in)),
    # weights stored in PyTorch (out_features, in_features) layout.
    kw, kb = jax.random.split(key)
    bound = 1.0 / jnp.sqrt(jnp.float32(fan_in))
    w = jax.random.uniform(kw, (fan_out, fan_in), jnp.float32, -bound, bound)
    b = jax.random.uniform(kb, (fan_out,), jnp.float32, -bound, bound)
    return w, b


def _reference(x, w1, b1, w2, b2):
    return jnp.maximum(x @ w1.T + b1, 0.0) @ w2.T + b2


if __name__ == "__main__":
    input_size, hidden_size, batch = 16, 32, 8

    key = jax.random.PRNGKey(0)
    k_x, k_l1, k_l2, k_x2 = jax.random.split(key, 4)

    x = jax.random.normal(k_x, (batch, input_size), jnp.float32)
    w1, b1 = init_linear_params(k_l1, input_size, hidden_size)
    w2, b2 = init_linear_params(k_l2, hidden_size, 1)

    # Small single-tile case (launch-bound regime; zero wrapper plumbing on x).
    out = jax.block_until_ready(baseline_network_forward(x, w1, b1, w2, b2))
    ref = _reference(x, w1, b1, w2, b2)
    assert out.shape == (batch, 1)
    assert jnp.allclose(out, ref, atol=1e-5, rtol=1e-5)

    # Exercise the gridded, double-buffered path with a ragged last tile
    # (B=300, TB=128 -> 3 tiles, last tile partially out of bounds).
    batch2 = 300
    x2 = jax.random.normal(k_x2, (batch2, input_size), jnp.float32)
    out2 = jax.block_until_ready(
        baseline_network_forward(x2, w1, b1, w2, b2, tb_max=128))
    ref2 = _reference(x2, w1, b1, w2, b2)
    assert out2.shape == (batch2, 1)
    assert jnp.allclose(out2, ref2, atol=1e-5, rtol=1e-5)

    print("KERNEL_OK")
</pallas_src>

<mosaic_0001>
module attributes {stable_mosaic.version = 11 : i64} {
  func.func @mlp_kernel(%arg0: i32, %arg1: memref<8x16xf32, #tpu.memory_space<vmem>>, %arg2: memref<32x16xf32, #tpu.memory_space<vmem>>, %arg3: memref<32x2xf32, #tpu.memory_space<vmem>>, %arg4: memref<1xf32, #tpu.memory_space<smem>>, %arg5: memref<1x8xf32, #tpu.memory_space<vmem>>) attributes {dimension_semantics = [#tpu.dimension_semantics<parallel>], iteration_bounds = array<i64: 1>, scalar_prefetch = 0 : i64, scratch_operands = 0 : i64, tpu.core_type = #tpu.core_type<tc>, window_params = [{transform_indices = @transform_0, window_bounds = array<i64: 8, 16>}, {pipeline_mode = #tpu.pipeline_mode<synchronous>, transform_indices = @transform_1, window_bounds = array<i64: 32, 16>}, {pipeline_mode = #tpu.pipeline_mode<synchronous>, transform_indices = @transform_2, window_bounds = array<i64: 32, 2>}, {transform_indices = @transform_3, window_bounds = array<i64: 1>}, {transform_indices = @transform_4, window_bounds = array<i64: 1, 8>}]} {
    %c0 = arith.constant 0 : index
    %c0_0 = arith.constant 0 : index
    %0 = vector.load %arg1[%c0, %c0_0] : memref<8x16xf32, #tpu.memory_space<vmem>>, vector<8x16xf32>
    %c0_1 = arith.constant 0 : index
    %c0_2 = arith.constant 0 : index
    %1 = vector.load %arg2[%c0_1, %c0_2] : memref<32x16xf32, #tpu.memory_space<vmem>>, vector<32x16xf32>
    %cst = arith.constant dense<0.000000e+00> : vector<32x8xf32>
    %2 = tpu.matmul %1, %0, %cst {dimension_numbers = #tpu.dot_dimension_numbers<[1], [1], [0], [0], [0, 0, 1, 0], [], []>} : vector<32x16xf32>, vector<8x16xf32>, vector<32x8xf32> -> vector<32x8xf32>
    %c0_3 = arith.constant 0 : index
    %c0_4 = arith.constant 0 : index
    %3 = vector.load %arg3[%c0_3, %c0_4] : memref<32x2xf32, #tpu.memory_space<vmem>>, vector<32x2xf32>
    %4 = vector.extract_strided_slice %3 {offsets = [0, 0], sizes = [32, 1], strides = [1, 1]} : vector<32x2xf32> to vector<32x1xf32>
    %5 = vector.extract_strided_slice %3 {offsets = [0, 1], sizes = [32, 1], strides = [1, 1]} : vector<32x2xf32> to vector<32x1xf32>
    %6 = vector.broadcast %4 : vector<32x1xf32> to vector<32x8xf32>
    %7 = arith.addf %2, %6 : vector<32x8xf32>
    %cst_5 = arith.constant 0.000000e+00 : f32
    %8 = vector.broadcast %cst_5 : f32 to vector<32x8xf32>
    %9 = arith.maximumf %7, %8 : vector<32x8xf32>
    %10 = vector.broadcast %5 : vector<32x1xf32> to vector<32x8xf32>
    %11 = arith.mulf %9, %10 : vector<32x8xf32>
    %cst_6 = arith.constant dense<0.000000e+00> : vector<8xf32>
    %12 = vector.multi_reduction <add>, %11, %cst_6 [0] : vector<32x8xf32> to vector<8xf32>
    %13 = vector.shape_cast %12 : vector<8xf32> to vector<1x8xf32>
    %c0_7 = arith.constant 0 : index
    %14 = memref.load %arg4[%c0_7] : memref<1xf32, #tpu.memory_space<smem>>
    %15 = vector.broadcast %14 : f32 to vector<1x8xf32>
    %16 = arith.addf %13, %15 : vector<1x8xf32>
    %c0_8 = arith.constant 0 : index
    %c0_9 = arith.constant 0 : index
    %17 = vector.load %arg5[%c0_8, %c0_9] : memref<1x8xf32, #tpu.memory_space<vmem>>, vector<1x8xf32>
    tpu.vector_store %arg5[%c0_8, %c0_9], %16 {strides = array<i32>} : memref<1x8xf32, #tpu.memory_space<vmem>>, vector<1x8xf32>,
    return
  }
  func.func @transform_0(%arg0: i32) -> (i32, i32) {
    %c0_i32 = arith.constant 0 : i32
    %c0_i32_0 = arith.constant 0 : i32
    return %arg0, %c0_i32 : i32, i32
  }
  func.func @transform_1(%arg0: i32) -> (i32, i32) {
    %c0_i32 = arith.constant 0 : i32
    %c0_i32_0 = arith.constant 0 : i32
    %c0_i32_1 = arith.constant 0 : i32
    return %c0_i32, %c0_i32_0 : i32, i32
  }
  func.func @transform_2(%arg0: i32) -> (i32, i32) {
    %c0_i32 = arith.constant 0 : i32
    %c0_i32_0 = arith.constant 0 : i32
    %c0_i32_1 = arith.constant 0 : i32
    return %c0_i32, %c0_i32_0 : i32, i32
  }
  func.func @transform_3(%arg0: i32) -> i32 {
    %c0_i32 = arith.constant 0 : i32
    %c0_i32_0 = arith.constant 0 : i32
    return %c0_i32 : i32
  }
  func.func @transform_4(%arg0: i32) -> (i32, i32) {
    %c0_i32 = arith.constant 0 : i32
    %c0_i32_0 = arith.constant 0 : i32
    return %c0_i32, %arg0 : i32, i32
  }
}

</mosaic_0001>

<bundles_post_ra>
// kernel: tpu_custom_call.1
= control target key start
LH: loop header
LB: loop body
LE: loop exit
PB: predicated region body
PF: predicated region fallthrough
CT: control target
= control target key end

     0   :  { %vm48_vm0 = vcmask 130048   ;;  %s335_s0 = inlined_call_operand.vmem [shape: f32[8,16], index: 0, kind: input, shape index: {}]   ;;  %s336_s1 = inlined_call_operand.vmem [shape: f32[32,16], index: 1, kind: input, shape index: {}]   ;;  %s337_s2 = inlined_call_operand.vmem [shape: f32[32,2], index: 2, kind: input, shape index: {}]   ;;  %s338_s3 = inlined_call_operand.<no memory space> [shape: f32[1], index: 3, kind: input, shape index: {}]   ;;  %s339_s4 = inlined_call_operand.hbm [shape: f32[1,8], index: 4, kind: output, shape index: {}]  }
   0x1   :  { %v19_v0 = vld [vmem:[%s335_s0] sm:$0xff]  ;;  %v22_v2 = vld [vmem:[%s336_s1 + $0x10] sm:$0xff]  ;;  %v21_v3 = vld [vmem:[%s336_s1 + $0x8] sm:$0xff] }
   0x2   :  { %v20_v1 = vld [vmem:[%s336_s1] sm:$0xff]  ;;  %216 = vmatprep.subr.msk.mxu0 %vm48_vm0, %v19_v0  ;;  %224 = vmatprep.subr.msk.mxu1 %vm48_vm0, %v19_v0  ;;  %v23_v4 = vld [vmem:[%s336_s1 + $0x18] sm:$0xff]  ;;  %v26_v5 = vld [vmem:[%s337_s2 + $0x10] sm:$0xff] }
   0x3   :  { %217 = vmatpush3.xpose.msk.msra.mxu0 %vm48_vm0, %v19_v0  ;;  %225 = vmatpush3.xpose.msk.msra.mxu1 %vm48_vm0, %v19_v0  ;;  %v24_v6 = vld [vmem:[%s337_s2] sm:$0xff] }
   0x4   :  { %218 = vmatprep.mubr.msk.f32.mxu0 %vm48_vm0, %v20_v1  ;;  %221 = vmatprep.mubr.msk.f32.mxu1 %vm48_vm0, %v22_v2 }
   0x5   :  { %10 = vsyncpa [#allocation4], 0  ;;  %v257_v7 = vmov 0   ;;  %v27_v8 = vld [vmem:[%s337_s2 + $0x18] sm:$0xff]  ;;  %v25_v9 = vld [vmem:[%s337_s2 + $0x8] sm:$0xff]  ;;  %v258_v10 = vmov 1   ;;  %v188_v47 = vstv %s338_s3 }
   0x6   :  { %230 = vset.pattern.permute.xlu1 %v257_v7  ;;  %229 = vset.pattern.permute.xlu0 %v257_v7  ;;  %vm173_vm1 = vcmask 64512   ;;  %s259_s6 = smov [#allocation3]   ;;  %vm190_vm2 = vcmask 57344  }
   0x7   :  { %219 = vmatmul.mubr.msk.f32.vlgmr.msra.gmra.mrb[0].mxu0 %vm48_vm0, %v21_v3  ;;  %222 = vmatmul.mubr.msk.f32.vlgmr.msra.gmra.mrb[0].mxu1 %vm48_vm0, %v23_v4  ;;  %s198_s7 = sshll.u32 %s259_s6, 4  ;;  %s199_s7 = int_to_ptr.vmem [resolvable:$true] %s198_s7 }
   0x8   :  { %40 = vperm.xlu1 %230, %v26_v5   ;;  %30 = vperm.xlu0 %229, %v24_v6   ;;  %s233_s8 = scalar_lea.vmem %s199_s7, 16  ;;  %s237_s9 = scalar_lea.vmem %s199_s7, 32 }
   0x9   :  { %p234_p0 = scmp.ne.s32.totalorder %s199_s7, %s233_s8  ;;  %p238_p1 = scmp.lt.s32.totalorder %s199_s7, %s199_s7 }
   0xa   :  { %p239_p2 = scmp.lt.s32.totalorder %s237_s9, %s233_s8 }
   0xc   :  { %45 = vperm.xlu1 %230, %v27_v8   ;;  %35 = vperm.xlu0 %229, %v25_v9   ;;  %p240_p3 = por %p239_p2, %p238_p1 }
   0xe   :  { %p241_p4 = pnand %p240_p3, %p234_p0 }
  0x10   :  { %232 = vset.pattern.permute.xlu1 %v258_v10  ;;  %231 = vset.pattern.permute.xlu0 %v258_v10 }
  0x11   :  { %158 = vperm.xlu1 %232, %v25_v9   ;;  %154 = vperm.xlu0 %231, %v24_v6  }
  0x15   :  { %162 = vperm.xlu1 %232, %v26_v5   ;;  %166 = vperm.xlu0 %231, %v27_v8  }
  0x87   :  { %v41_v11 = vpop.permute.xlu1 %40  ;;  %v31_v12 = vpop.permute.xlu0 %30 }
  0x8b   :  { %v46_v13 = vpop.permute.xlu1 %45  ;;  %v36_v14 = vpop.permute.xlu0 %35 }
  0x90   :  { %v159_v15 = vpop.permute.xlu1 %158  ;;  %v155_v16 = vpop.permute.xlu0 %154 }
  0x94   :  { %v163_v30 = vpop.permute.xlu1 %162  ;;  %v167_v31 = vpop.permute.xlu0 %166 }
  0xda   :  { %v220_v17 = vpop.f32.mrb[0].mxu0  ;;  %v223_v18 = vpop.f32.mrb[0].mxu1 }
  0xdb   :  { %v136_v19 = vadd.f32 %v220_v17, %v36_v14  ;;  %v146_v20 = vadd.f32 %v223_v18, %v46_v13  ;;  %v130_v21 = vpop.f32.mrb[1].mxu0  ;;  %v140_v22 = vpop.f32.mrb[1].mxu1 }
  0xdc   :  { %v131_v23 = vadd.f32 %v130_v21, %v31_v12  ;;  %v141_v24 = vadd.f32 %v140_v22, %v41_v11 }
  0xdd   :  { %v150_v25 = vmax.f32 %v136_v19, 0.0  ;;  %v152_v26 = vmax.f32 %v146_v20, 0.0 }
  0xde   :  { %v149_v27 = vmax.f32 %v131_v23, 0.0  ;;  %v151_v28 = vmax.f32 %v141_v24, 0.0 }
  0xdf   :  { %v170_v29 = vmul.f32 %v159_v15, %v150_v25  ;;  %v172_v36 = vmul.f32 %v167_v31, %v152_v26 }
  0xe0   :  { %v169_v32 = vmul.f32 %v155_v16, %v149_v27  ;;  %v171_v33 = vmul.f32 %v163_v30, %v151_v28 }
  0xe1   :  { %v175_v34 = vsel %vm173_vm1, %v170_v29, 0.0  ;;  %v179_v40 = vsel %vm173_vm1, %v172_v36, 0.0 }
  0xe2   :  { %v174_v35 = vsel %vm173_vm1, %v169_v32, 0.0  ;;  %v177_v38 = vsel %vm173_vm1, %v171_v33, 0.0 }
  0xe3   :  { %v176_v37 = vadd.f32 %v175_v34, %v174_v35 }
  0xe5   :  { %v178_v39 = vadd.f32 %v177_v38, %v176_v37 }
  0xe7   :  { %v180_v41 = vadd.f32 %v179_v40, %v178_v39 }
  0xe9   :  { %v181_v42 = vrot.slane %v180_v41, 4 }
  0xeb   :  { %v182_v43 = vadd.f32 %v181_v42, %v180_v41 }
  0xed   :  { %v183_v44 = vrot.slane %v182_v43, 2 }
  0xef   :  { %v184_v45 = vadd.f32 %v183_v44, %v182_v43 }
  0xf1   :  { %v185_v46 = vrot.slane %v184_v45, 1 }
  0xf3   :  { %v186_v48 = vadd.f32 %v185_v46, %v184_v45 }
  0xf5   :  { %v189_v49 = vadd.f32 %v188_v47, %v186_v48 }
  0xf7   :  { %191 = vst.msk [vmem:[#allocation3] sm:$0x1] %vm190_vm2, %v189_v49 }
  0xf8   :  { %244 = shalt.err (!%p241_p4)
}
  0xf9   :  { %s245_s12 = scalar_lea.hbm %s339_s4, 16 }
  0xfa   :  { %p246_p5 = scmp.ne.s32.totalorder %s339_s4, %s245_s12  ;;  %p249_p6 = scmp.lt.u32.totalorder %s245_s12, %s339_s4 }
  0xfc   :  { %p251_p7 = pnand %p249_p6, %p246_p5 }
  0xfe   :  { %254 = shalt.err (!%p251_p7)
}
  0xff   :  { %201 = dma.vmem_to_hbm [thread:$0]  %s199_s7, 16, %s339_s4, [#allocation4]  }
 0x100   :  { %255 = dma.done.wait [#allocation4], 16  }
 0x101   :  { %256 = vsyncadd [#allocation4], 4294967280 }
 0x102   :  { %205 = vsyncpa [#allocation4], 1 }

</bundles_post_ra>
